<compile_context>
chip_gen: v7x
topology: tpu7x:2x2x1
jax: 0.10.0
libtpu: 0.0.40
codegen_flags: <defaults>
</compile_context>

<pallas_src>
import functools

import jax
import jax.numpy as jnp
from jax.experimental import pallas as pl
from jax.experimental.pallas import tpu as pltpu

LANES = 128
MAX_TILE_ROWS_F32 = 1024  # 1024 x 128 f32 = 512 KiB per input block


def _thresholded_sq(d2, thr):
    """Contribution of one threshold: d2 where |diff| > thr else 0 (thr static)."""
    if thr < 0.0:
        return d2  # |diff| > negative threshold is always true
    return jnp.where(d2 > (thr * thr), d2, jnp.zeros_like(d2))


def _loss_kernel(p_ref, t_ref, out_ref, acc_ref, *, vt, ft, block_rows,
                 inner_steps, valid_rows, need_mask, two_axes):
    if two_axes:
        c = pl.program_id(0)        # CORE_PARALLEL axis (v7x megacore split)
        i = pl.program_id(1)        # reduction axis
        b = c * inner_steps + i     # UNclamped linear block index
    else:
        i = pl.program_id(0)
        b = i

    @pl.when(i == 0)
    def _():
        acc_ref[...] = jnp.zeros_like(acc_ref)

    p = p_ref[...].astype(jnp.float32)
    t = t_ref[...].astype(jnp.float32)
    d = p - t
    d2 = d * d
    # Fused velocity + flow contributions (4 VPU ops/elem beyond sub/mul).
    contrib = _thresholded_sq(d2, vt) + _thresholded_sq(d2, ft)

    def accumulate(x):
        # Fold the (block_rows, 128) tile into the vreg-shaped (8, 128)
        # accumulator with pure VPU adds: no full-tile scratch RMW, no XLU.
        acc_ref[...] += jnp.sum(x.reshape(block_rows // 8, 8, LANES), axis=0)

    if need_mask:
        # Only the block that crosses the valid-row boundary (partial last
        # block, or a clamped duplicate block from rounding nblocks up to the
        # core count) pays for the mask; interior blocks take the fast path.
        is_boundary = (b + 1) * block_rows > valid_rows

        @pl.when(jnp.logical_not(is_boundary))
        def _():
            accumulate(contrib)

        @pl.when(is_boundary)
        def _():
            row_idx = b * block_rows + jax.lax.broadcasted_iota(
                jnp.int32, contrib.shape, 0)
            accumulate(jnp.where(row_idx < valid_rows, contrib, 0.0))
    else:
        accumulate(contrib)

    @pl.when(i == inner_steps - 1)
    def _():
        out_ref[...] = jnp.sum(acc_ref[...], keepdims=True)


def _num_tensorcores_per_chip():
    """2 on v7x (dual TensorCore), 1 on v5e/v6e."""
    try:
        kind = jax.devices()[0].device_kind.lower()
    except Exception:
        return 1
    return 2 if "v7" in kind else 1


def custom_loss(predictions, targets, *, velocity_threshold=0.5,
                flow_threshold=0.8, max_tile_rows=None):
    """velocity_loss + flow_loss, matching PyTorch CustomLoss.forward."""
    assert predictions.shape == targets.shape
    n = predictions.size
    assert n > 0
    vt = float(velocity_threshold)   # static thresholds baked into the kernel
    ft = float(flow_threshold)       # (recompile if they change)

    # Native dtype is streamed; the f32 cast happens in-kernel.
    p_flat = jnp.ravel(predictions)
    t_flat = jnp.ravel(targets)

    # Split off the (<128 element) lane tail and sum it in the wrapper instead
    # of jnp.pad-copying both full inputs for misaligned element counts.
    rem = n % LANES
    n_main = n - rem
    tail_sum = jnp.float32(0.0)
    if rem:
        tp = jax.lax.slice(p_flat, (n_main,), (n,)).astype(jnp.float32)
        tt = jax.lax.slice(t_flat, (n_main,), (n,)).astype(jnp.float32)
        td = tp - tt
        td2 = td * td
        tail_sum = jnp.sum(_thresholded_sq(td2, vt) + _thresholded_sq(td2, ft))
        p_flat = jax.lax.slice(p_flat, (0,), (n_main,))
        t_flat = jax.lax.slice(t_flat, (0,), (n_main,))

    if n_main == 0:  # fewer than 128 elements total
        return tail_sum / jnp.float32(n)

    rows = n_main // LANES
    p2 = p_flat.reshape(rows, LANES)
    t2 = t_flat.reshape(rows, LANES)

    if rows < 8:
        # Tiny input (<1024 elements): pad rows up to one (8,128) tile.
        # Zero-diff padding contributes exactly 0 to both thresholded sums.
        p2 = jnp.pad(p2, ((0, 8 - rows), (0, 0)))
        t2 = jnp.pad(t2, ((0, 8 - rows), (0, 0)))
        rows = 8

    # Block sizing: multiple of 8 rows, scaled with dtype width so each input
    # block DMA stays >= 512 KiB (amortizes the ~0.35 us per-grid-step cost).
    # f32@1024 / bf16@2048 rows -> 2 inputs x 2 buffers x 512 KiB ~= 2 MiB VMEM
    # plus a 4 KiB accumulator: well inside every chip's scoped default.
    if max_tile_rows is None:
        itemsize = jnp.dtype(predictions.dtype).itemsize
        max_tile_rows = MAX_TILE_ROWS_F32 * max(1, 4 // max(1, itemsize))
    max_tile_rows = max(8, (int(max_tile_rows) // 8) * 8)
    block_rows = min(max_tile_rows, (rows // 8) * 8)
    nblocks = (rows + block_rows - 1) // block_rows

    # Generation-aware core split: only v7x has 2 TensorCores. On 1-TC chips a
    # 2-way grid split is just a serial loop with a wasted duplicate block.
    nc = 2 if (_num_tensorcores_per_chip() == 2 and nblocks >= 2) else 1
    inner = (nblocks + nc - 1) // nc
    need_mask = (nc * inner * block_rows) != rows
    two_axes = nc > 1

    kernel = functools.partial(
        _loss_kernel, vt=vt, ft=ft, block_rows=block_rows, inner_steps=inner,
        valid_rows=rows, need_mask=need_mask, two_axes=two_axes)

    if two_axes:
        def in_map(c, i):
            # Clamp so the DMA never reads a fully out-of-range block; the
            # in-kernel row mask (from the UNclamped index) zeroes duplicates.
            return (jnp.minimum(c * inner + i, nblocks - 1), 0)

        grid = (nc, inner)
        out_map = lambda c, i: (c, 0)
        core_parallel = getattr(pltpu, "CORE_PARALLEL", "parallel")
        dim_sems = (core_parallel, "arbitrary")
    else:
        def in_map(i):
            return (i, 0)

        grid = (inner,)
        out_map = lambda i: (0, 0)
        dim_sems = ("arbitrary",)

    partials = pl.pallas_call(
        kernel,
        out_shape=jax.ShapeDtypeStruct((nc, 1), jnp.float32),
        grid_spec=pltpu.PrefetchScalarGridSpec(
            num_scalar_prefetch=0,
            grid=grid,
            in_specs=[
                pl.BlockSpec((block_rows, LANES), in_map),
                pl.BlockSpec((block_rows, LANES), in_map),
            ],
            out_specs=pl.BlockSpec((1, 1), out_map),
            scratch_shapes=[pltpu.VMEM((8, LANES), jnp.float32)],
        ),
        compiler_params=pltpu.CompilerParams(dimension_semantics=dim_sems),
    )(p2, t2)

    return (jnp.sum(partials) + tail_sum) / jnp.float32(n)


def _reference(predictions, targets, velocity_threshold=0.5, flow_threshold=0.8):
    p = predictions.astype(jnp.float32)
    t = targets.astype(jnp.float32)
    diff = jnp.abs(p - t)
    vel = jnp.where(diff > velocity_threshold, diff, 0.0)
    flo = jnp.where(diff > flow_threshold, diff, 0.0)
    return jnp.mean(vel ** 2) + jnp.mean(flo ** 2)


if __name__ == "__main__":
    key = jax.random.PRNGKey(0)
    k1, k2, k3, k4 = jax.random.split(key, 4)

    # Dense prediction map: (batch, channels, H, W). Single full block, no mask.
    preds = jax.random.normal(k1, (2, 4, 16, 16), dtype=jnp.float32)
    tgts = jax.random.normal(k2, (2, 4, 16, 16), dtype=jnp.float32)
    loss = jax.block_until_ready(custom_loss(preds, tgts))
    ref = _reference(preds, tgts)
    assert jnp.allclose(loss, ref, rtol=1e-5, atol=1e-6), (loss, ref)

    # Odd size (not a multiple of 128): exercises the wrapper lane-tail path
    # and the tiny-row zero-pad (no full-array pad copy).
    p2 = jax.random.normal(k3, (3, 5, 37), dtype=jnp.float32)
    t2 = jax.random.normal(k4, (3, 5, 37), dtype=jnp.float32)
    loss2 = jax.block_until_ready(custom_loss(p2, t2))
    ref2 = _reference(p2, t2)
    assert jnp.allclose(loss2, ref2, rtol=1e-5, atol=1e-6), (loss2, ref2)

    # Multi-block bf16 streaming with a partial last block: exercises the
    # boundary-gated row mask and the (8,128) accumulator across 9 blocks.
    p3 = jax.random.normal(k1, (4, 2, 65, 130), dtype=jnp.bfloat16)
    t3 = jax.random.normal(k2, (4, 2, 65, 130), dtype=jnp.bfloat16)
    loss3 = jax.block_until_ready(custom_loss(p3, t3, max_tile_rows=64))
    ref3 = _reference(p3, t3)
    assert jnp.allclose(loss3, ref3, rtol=1e-3, atol=1e-4), (loss3, ref3)

    print("KERNEL_OK")
</pallas_src>

<mosaic_0001>
module attributes {stable_mosaic.version = 11 : i64} {
  func.func @_loss_kernel(%arg0: i32, %arg1: memref<16x128xf32, #tpu.memory_space<vmem>>, %arg2: memref<16x128xf32, #tpu.memory_space<vmem>>, %arg3: memref<1x1xf32, #tpu.memory_space<vmem>>, %arg4: memref<8x128xf32, #tpu.memory_space<vmem>>) attributes {dimension_semantics = [#tpu.dimension_semantics<arbitrary>], iteration_bounds = array<i64: 1>, scalar_prefetch = 0 : i64, scratch_operands = 1 : i64, tpu.core_type = #tpu.core_type<tc>, window_params = [{transform_indices = @transform_0, window_bounds = array<i64: 16, 128>}, {transform_indices = @transform_1, window_bounds = array<i64: 16, 128>}, {pipeline_mode = #tpu.pipeline_mode<synchronous>, transform_indices = @transform_2, window_bounds = array<i64: 1, 1>}]} {
    %c0_i32 = arith.constant 0 : i32
    %0 = arith.cmpi eq, %arg0, %c0_i32 : i32
    %1 = arith.extui %0 : i1 to i32
    %c0_i32_0 = arith.constant 0 : i32
    %2 = arith.cmpi ne, %1, %c0_i32_0 : i32
    scf.if %2 {
      %cst_14 = arith.constant 0.000000e+00 : f32
      %24 = vector.broadcast %cst_14 : f32 to vector<8x128xf32>
      %c0_15 = arith.constant 0 : index
      %c0_16 = arith.constant 0 : index
      %25 = vector.load %arg4[%c0_15, %c0_16] : memref<8x128xf32, #tpu.memory_space<vmem>>, vector<8x128xf32>
      tpu.vector_store %arg4[%c0_15, %c0_16], %24 {strides = array<i32>} : memref<8x128xf32, #tpu.memory_space<vmem>>, vector<8x128xf32>,
    } else {
    }
    %c0 = arith.constant 0 : index
    %c0_1 = arith.constant 0 : index
    %3 = vector.load %arg1[%c0, %c0_1] : memref<16x128xf32, #tpu.memory_space<vmem>>, vector<16x128xf32>
    %c0_2 = arith.constant 0 : index
    %c0_3 = arith.constant 0 : index
    %4 = vector.load %arg2[%c0_2, %c0_3] : memref<16x128xf32, #tpu.memory_space<vmem>>, vector<16x128xf32>
    %5 = arith.subf %3, %4 : vector<16x128xf32>
    %6 = arith.mulf %5, %5 : vector<16x128xf32>
    %cst = arith.constant 2.500000e-01 : f32
    %7 = vector.broadcast %cst : f32 to vector<16x128xf32>
    %8 = arith.cmpf ogt, %6, %7 : vector<16x128xf32>
    %cst_4 = arith.constant 0.000000e+00 : f32
    %9 = vector.broadcast %cst_4 : f32 to vector<16x128xf32>
    %10 = arith.select %8, %6, %9 : vector<16x128xi1>, vector<16x128xf32>
    %cst_5 = arith.constant 6.400000e-01 : f32
    %11 = vector.broadcast %cst_5 : f32 to vector<16x128xf32>
    %12 = arith.cmpf ogt, %6, %11 : vector<16x128xf32>
    %cst_6 = arith.constant 0.000000e+00 : f32
    %13 = vector.broadcast %cst_6 : f32 to vector<16x128xf32>
    %14 = arith.select %12, %6, %13 : vector<16x128xi1>, vector<16x128xf32>
    %15 = arith.addf %10, %14 : vector<16x128xf32>
    %c0_7 = arith.constant 0 : index
    %c0_8 = arith.constant 0 : index
    %16 = vector.load %arg4[%c0_7, %c0_8] : memref<8x128xf32, #tpu.memory_space<vmem>>, vector<8x128xf32>
    %17 = vector.shape_cast %15 : vector<16x128xf32> to vector<2x8x128xf32>
    %cst_9 = arith.constant dense<0.000000e+00> : vector<8x128xf32>
    %18 = vector.multi_reduction <add>, %17, %cst_9 [0] : vector<2x8x128xf32> to vector<8x128xf32>
    %19 = arith.addf %16, %18 : vector<8x128xf32>
    %c0_10 = arith.constant 0 : index
    %c0_11 = arith.constant 0 : index
    %20 = vector.load %arg4[%c0_10, %c0_11] : memref<8x128xf32, #tpu.memory_space<vmem>>, vector<8x128xf32>
    tpu.vector_store %arg4[%c0_10, %c0_11], %19 {strides = array<i32>} : memref<8x128xf32, #tpu.memory_space<vmem>>, vector<8x128xf32>,
    %c0_i32_12 = arith.constant 0 : i32
    %21 = arith.cmpi eq, %arg0, %c0_i32_12 : i32
    %22 = arith.extui %21 : i1 to i32
    %c0_i32_13 = arith.constant 0 : i32
    %23 = arith.cmpi ne, %22, %c0_i32_13 : i32
    scf.if %23 {
      %c0_14 = arith.constant 0 : index
      %c0_15 = arith.constant 0 : index
      %24 = vector.load %arg4[%c0_14, %c0_15] : memref<8x128xf32, #tpu.memory_space<vmem>>, vector<8x128xf32>
      %25 = vector.shape_cast %24 : vector<8x128xf32> to vector<1x8x128xf32>
      %cst_16 = arith.constant dense<0.000000e+00> : vector<1xf32>
      %26 = vector.multi_reduction <add>, %25, %cst_16 [1, 2] : vector<1x8x128xf32> to vector<1xf32>
      %27 = vector.shape_cast %26 : vector<1xf32> to vector<1x1x1xf32>
      %28 = vector.extract %27[0, 0, 0] : f32 from vector<1x1x1xf32>
      %29 = vector.broadcast %28 : f32 to vector<1x1xf32>
      %c0_17 = arith.constant 0 : index
      %c0_18 = arith.constant 0 : index
      %30 = vector.load %arg3[%c0_17, %c0_18] : memref<1x1xf32, #tpu.memory_space<vmem>>, vector<1x1xf32>
      tpu.vector_store %arg3[%c0_17, %c0_18], %29 {strides = array<i32>} : memref<1x1xf32, #tpu.memory_space<vmem>>, vector<1x1xf32>,
    } else {
    }
    return
  }
  func.func @transform_0(%arg0: i32) -> (i32, i32) {
    %c0_i32 = arith.constant 0 : i32
    %c0_i32_0 = arith.constant 0 : i32
    return %arg0, %c0_i32 : i32, i32
  }
  func.func @transform_1(%arg0: i32) -> (i32, i32) {
    %c0_i32 = arith.constant 0 : i32
    %c0_i32_0 = arith.constant 0 : i32
    return %arg0, %c0_i32 : i32, i32
  }
  func.func @transform_2(%arg0: i32) -> (i32, i32) {
    %c0_i32 = arith.constant 0 : i32
    %c0_i32_0 = arith.constant 0 : i32
    %c0_i32_1 = arith.constant 0 : i32
    return %c0_i32, %c0_i32_0 : i32, i32
  }
}

</mosaic_0001>

<bundles_post_ra>
// kernel: tpu_custom_call.1
= control target key start
LH: loop header
LB: loop body
LE: loop exit
PB: predicated region body
PF: predicated region fallthrough
CT: control target
= control target key end

     0   :  { %7 = vsyncpa [#allocation4], 0  ;;  %s234_s0 = inlined_call_operand.hbm [shape: f32[16,128], index: 0, kind: input, shape index: {}]   ;;  %s235_s1 = inlined_call_operand.hbm [shape: f32[16,128], index: 1, kind: input, shape index: {}]   ;;  %s236_s2 = inlined_call_operand.hbm [shape: f32[1,1], index: 2, kind: output, shape index: {}]  }
   0x1   :  { %8 = vsyncpa [#allocation7], 0 }
   0x2   :  { %9 = vsyncpa [#allocation5], 0  ;;  %s178_s9 = smov [#allocation3]   ;;  %s106_s13 = scalar_lea.hbm %s234_s0, 256 }
   0x3   :  { %s15_s10 = sshll.u32 %s178_s9, 4  ;;  %p107_p0 = scmp.ne.s32.totalorder %s234_s0, %s106_s13  ;;  %s16_s10 = int_to_ptr.vmem [resolvable:$true] %s15_s10 }
   0x4   :  { %p110_p1 = scmp.lt.u32.totalorder %s106_s13, %s234_s0 }
   0x6   :  { %p112_p2 = pnand %p110_p1, %p107_p0 }
   0x8   :  { %115 = shalt.err (!%p112_p2)
}
   0x9   :  { %s116_s18 = scalar_lea.vmem %s16_s10, 256  ;;  %p121_p4 = scmp.lt.s32.totalorder %s16_s10, %s16_s10 }
   0xa   :  { %p117_p3 = scmp.ne.s32.totalorder %s16_s10, %s116_s18  ;;  %p122_p5 = scmp.lt.s32.totalorder %s116_s18, %s116_s18 }
   0xc   :  { %p123_p6 = por %p122_p5, %p121_p4 }
   0xe   :  { %p124_p7 = pnand %p123_p6, %p117_p3 }
  0x10   :  { %127 = shalt.err (!%p124_p7)
}
  0x11   :  { %s179_s19 = smov 128   ;;  %s180_s20 = smov 8  }
  0x12   :  { %21 = dma.hbm_to_vmem [thread:$0]  %s234_s0, 256, %s16_s10, [#allocation4], %s179_s19, %s179_s19, %s180_s20  }
  0x13   :  { %s181_s23 = smov [#allocation6]   ;;  %s128_s27 = scalar_lea.hbm %s235_s1, 256 }
  0x14   :  { %s27_s24 = sshll.u32 %s181_s23, 4  ;;  %p129_p8 = scmp.ne.s32.totalorder %s235_s1, %s128_s27  ;;  %s28_s24 = int_to_ptr.vmem [resolvable:$true] %s27_s24 }
  0x15   :  { %p132_p9 = scmp.lt.u32.totalorder %s128_s27, %s235_s1 }
  0x17   :  { %p134_p10 = pnand %p132_p9, %p129_p8 }
  0x19   :  { %137 = shalt.err (!%p134_p10)
}
  0x1a   :  { %s138_s4 = scalar_lea.vmem %s28_s24, 256  ;;  %p143_p12 = scmp.lt.s32.totalorder %s28_s24, %s28_s24 }
  0x1b   :  { %p139_p11 = scmp.ne.s32.totalorder %s28_s24, %s138_s4  ;;  %p144_p13 = scmp.lt.s32.totalorder %s138_s4, %s138_s4 }
  0x1d   :  { %p145_p0 = por %p144_p13, %p143_p12 }
  0x1f   :  { %p146_p1 = pnand %p145_p0, %p139_p11 }
  0x21   :  { %149 = shalt.err (!%p146_p1)
}
  0x22   :  { %33 = dma.hbm_to_vmem [thread:$0]  %s235_s1, 256, %s28_s24, [#allocation7], %s179_s19, %s179_s19, %s180_s20  }
  0x23   :  { %172 = dma.done.wait [#allocation4], 256  }
  0x24   :  { %173 = vsyncadd [#allocation4], 4294967040 }
  0x25   :  { %174 = dma.done.wait [#allocation7], 256  }
  0x26   :  { %175 = vsyncadd [#allocation7], 4294967040  ;;  %v45_v0 = vld [vmem:[#allocation3] sm:$0xff]  ;;  %v46_v1 = vld [vmem:[#allocation3 + $0x8] sm:$0xff]  ;;  %s182_s1 = smov [#allocation8]   ;;  %vm81_vm4 = vcmask 0  }
  0x27   :  { %v47_v2 = vld [vmem:[#allocation6] sm:$0xff]  ;;  %v48_v3 = vld [vmem:[#allocation6 + $0x8] sm:$0xff]  ;;  %s89_s6 = sshll.u32 %s182_s1, 4  ;;  %s90_s6 = int_to_ptr.vmem [resolvable:$true] %s89_s6 }
  0x28   :  { %v49_v4 = vsub.f32 %v45_v0, %v47_v2  ;;  %v50_v5 = vsub.f32 %v46_v1, %v48_v3  ;;  %s150_s8 = scalar_lea.vmem %s90_s6, 16  ;;  %s154_s9 = scalar_lea.vmem %s90_s6, 32 }
  0x29   :  { %p151_p2 = scmp.ne.s32.totalorder %s90_s6, %s150_s8  ;;  %p155_p3 = scmp.lt.s32.totalorder %s90_s6, %s90_s6 }
  0x2a   :  { %v51_v6 = vmul.f32 %v49_v4, %v49_v4  ;;  %v52_v7 = vmul.f32 %v50_v5, %v50_v5  ;;  %p156_p4 = scmp.lt.s32.totalorder %s154_s9, %s150_s8 }
  0x2c   :  { %vm53_vm0 = vcmp.gt.f32.partialorder %v51_v6, 0.25  ;;  %vm57_vm1 = vcmp.gt.f32.partialorder %v51_v6, 0.64  ;;  %vm54_vm2 = vcmp.gt.f32.partialorder %v52_v7, 0.25  ;;  %vm58_vm3 = vcmp.gt.f32.partialorder %v52_v7, 0.64  ;;  %p157_p5 = por %p156_p4, %p155_p3 }
  0x2d   :  { %v55_v8 = vsel %vm53_vm0, %v51_v6, 0.0  ;;  %v59_v9 = vsel %vm57_vm1, %v51_v6, 0.0  ;;  %v56_v10 = vsel %vm54_vm2, %v52_v7, 0.0  ;;  %v60_v11 = vsel %vm58_vm3, %v52_v7, 0.0 }
  0x2e   :  { %v61_v12 = vadd.f32 %v59_v9, %v55_v8  ;;  %v62_v13 = vadd.f32 %v60_v11, %v56_v10  ;;  %p158_p6 = pnand %p157_p5, %p151_p2 }
  0x30   :  { %v64_v14 = vadd.f32 %v62_v13, %v61_v12 }
  0x32   :  { %71 = vadd.xlane.f32.xlu0 %v64_v14 }
  0xbf   :  { %v72_v15 = vpop.xlane.xlu0 %71 }
  0xc0   :  { %v73_v16 = vrot.slane %v72_v15, 4 }
  0xc2   :  { %v74_v17 = vadd.f32 %v73_v16, %v72_v15 }
  0xc4   :  { %v75_v18 = vrot.slane %v74_v17, 2 }
  0xc6   :  { %v76_v19 = vadd.f32 %v75_v18, %v74_v17 }
  0xc8   :  { %v77_v20 = vrot.slane %v76_v19, 1 }
  0xca   :  { %v78_v21 = vadd.f32 %v77_v20, %v76_v19 }
  0xcc   :  { %99 = vpush %v78_v21 }
  0xfd   :  { %s100_s7 = spop %99 }
  0xfe   :  { %v80_v22 = vstv %s100_s7 }
  0xff   :  { %82 = vst.msk [vmem:[#allocation8] sm:$0x1] %vm81_vm4, %v80_v22 }
 0x100   :  { %161 = shalt.err (!%p158_p6)
}
 0x101   :  { %s162_s12 = scalar_lea.hbm %s236_s2, 16 }
 0x102   :  { %p163_p7 = scmp.ne.s32.totalorder %s236_s2, %s162_s12  ;;  %p166_p8 = scmp.lt.u32.totalorder %s162_s12, %s236_s2 }
 0x104   :  { %p168_p9 = pnand %p166_p8, %p163_p7 }
 0x106   :  { %171 = shalt.err (!%p168_p9)
}
 0x107   :  { %92 = dma.vmem_to_hbm [thread:$0]  %s90_s6, 16, %s236_s2, [#allocation5]  }
 0x108   :  { %176 = dma.done.wait [#allocation5], 16  }
 0x109   :  { %177 = vsyncadd [#allocation5], 4294967280 }
 0x10a   :  { %96 = vsyncpa [#allocation4], 1 }
 0x10b   :  { %97 = vsyncpa [#allocation7], 1 }
 0x10c   :  { %98 = vsyncpa [#allocation5], 1 }

</bundles_post_ra>
